<compile_context>
chip_gen: v5e
topology: v5e:2x2
jax: 0.10.0
libtpu: 0.0.40
codegen_flags: <defaults>
</compile_context>

<pallas_src>
import jax
import jax.numpy as jnp
from jax.experimental import pallas as pl
from jax.experimental.pallas import tpu as pltpu


# ----------------------------------------------------------------------------- helpers
def _round_up(x, m):
    return (x + m - 1) // m * m


def _vmem_capacity_bytes():
    """Physical VMEM per TensorCore (128 MiB on v5e/v6e, 64 MiB on v7x).
    Falls back to the smallest (v7x) figure if the query API is unavailable."""
    try:
        cap = getattr(pltpu.get_tpu_info(), "vmem_capacity_bytes", None)
        if cap:
            return int(cap)
    except Exception:
        pass
    return 64 * 1024 * 1024


def _vmem_limit_bytes():
    """Generation-aware scoped-VMEM limit: ~100 MiB on 128 MiB chips (v5e/v6e),
    <=48 MiB on 64 MiB-per-core v7x, always leaving headroom for Mosaic scratch."""
    cap = _vmem_capacity_bytes()
    return int(max(32 * 1024 * 1024, min(cap - 16 * 1024 * 1024, 100 * 1024 * 1024)))


def _pick_row_tile(npad, hpad, budget_bytes):
    """Largest adjacency row tile (multiple of 128 dividing npad) such that ALL VMEM
    residents fit `budget_bytes`, conservatively assuming the pipeline double-buffers
    every operand: int8 adjacency slabs, bf16 hs, f32 out tile, dinv/bias."""
    fixed = 2 * npad * hpad * 2          # hs (bf16), 2 buffers
    fixed += 2 * 8 * hpad * 4            # bias (f32, sublane-padded), 2 buffers
    best = 128
    for tm in (1024, 512, 256, 128):
        if tm > npad or npad % tm:
            continue
        per_tile = (2 * tm * npad        # int8 adjacency slab, double-buffered
                    + 2 * tm * hpad * 4  # f32 output tile, double-buffered
                    + 2 * tm * 128 * 4)  # dinv tile (lane-padded), double-buffered
        if fixed + per_tile <= budget_bytes:
            best = tm
            break
    # v7x megacore: keep >=4 grid steps (>=2 per TensorCore) so both cores stream.
    while best > 128 and npad // best < 4:
        best //= 2
    return best


def _fused_fits(npad, hpad, budget_bytes):
    """Can A stay VMEM-resident across BOTH layers (single pallas_call, no streaming)?"""
    need = (3 * npad * npad          # int8 A + one bf16 in-kernel upcast of A
            + 20 * npad * hpad       # hs1/h1/hs2/h2/out intermediates (f32 + bf16)
            + 4 * hpad * hpad        # W2 (f32)
            + 256 * 1024)            # dinv/bias/slack
    return need <= budget_bytes


# ----------------------------------------------------------------------------- kernels
def _gcn_agg_kernel(adj_ref, hs_ref, dinv_ref, b_ref, out_ref):
    """One row tile of: relu( dinv_rows * (A_tile @ hs) + b ), padded rows zeroed.

    adj_ref : (TM, Np)  int8   raw (A + I) row tile, streamed from HBM
    hs_ref  : (Np, Hp)  bf16   column-scaled transformed features dinv[:,None]*(X@W)
    dinv_ref: (TM, 1)   f32    row normalization for this tile (0 on padded rows)
    b_ref   : (1,  Hp)  f32    bias
    out_ref : (TM, Hp)  f32    lane-dense activation tile
    """
    # int8 -> bf16 upcast (VPU) hides under the DMA/MXU slack; halves the HBM stream.
    a = adj_ref[...].astype(jnp.bfloat16)
    agg = jnp.dot(a, hs_ref[...], preferred_element_type=jnp.float32)   # MXU, f32 acc
    dinv = dinv_ref[...]
    act = jnp.maximum(agg * dinv + b_ref[...], 0.0)
    out_ref[...] = jnp.where(dinv > 0.0, act, 0.0)                      # padded rows -> 0


def _gcn_fused_kernel(adj_ref, hs1_ref, w2_ref, dinv_ref, b1_ref, b2_ref, out_ref):
    """Both GCN layers with A resident in VMEM (read from HBM once, used twice)."""
    a = adj_ref[...].astype(jnp.bfloat16)          # upcast once, reused by both layers
    dinv = dinv_ref[...]
    valid = dinv > 0.0
    # Layer 1: relu(Dinv (A+I) (Dinv X W1) + b1)
    h1 = jnp.dot(a, hs1_ref[...], preferred_element_type=jnp.float32) * dinv + b1_ref[...]
    h1 = jnp.where(valid, jnp.maximum(h1, 0.0), 0.0)
    # Layer 2 feature transform + column scale (tiny vs the NxN aggregations), then aggregate.
    hs2 = jnp.dot(dinv * h1, w2_ref[...], preferred_element_type=jnp.float32)
    hs2 = hs2.astype(jnp.bfloat16)
    h2 = jnp.dot(a, hs2, preferred_element_type=jnp.float32) * dinv + b2_ref[...]
    out_ref[...] = jnp.where(valid, jnp.maximum(h2, 0.0), 0.0)


# ----------------------------------------------------------------------------- callers
def _gcn_aggregate(adj_i8, hs_bf16, dinv_col, bias_row, vmem_limit):
    """relu(Dinv @ (A+I) @ hs + b) via a row-tiled, pipelined Pallas call (streamed A)."""
    npad = adj_i8.shape[0]
    hpad = hs_bf16.shape[1]
    tm = _pick_row_tile(npad, hpad, vmem_limit - 6 * 1024 * 1024)
    grid = (npad // tm,)

    flops = 2 * npad * npad * hpad
    bytes_accessed = (npad * npad                 # int8 adjacency
                      + npad * hpad * 2           # hs (bf16)
                      + npad * hpad * 4           # out (f32)
                      + npad * 4 + hpad * 4)      # dinv + bias

    # NOTE: hs/bias never change block index; single-buffering them
    # (pipeline_mode=pl.Buffered(1)) would free npad*hpad*2 B of VMEM on v7x — they are
    # kept default-buffered here (and budgeted as such in _pick_row_tile) for maximal
    # lowering portability.
    return pl.pallas_call(
        _gcn_agg_kernel,
        out_shape=jax.ShapeDtypeStruct((npad, hpad), jnp.float32),
        grid_spec=pltpu.PrefetchScalarGridSpec(
            num_scalar_prefetch=0,
            grid=grid,
            in_specs=[
                pl.BlockSpec((tm, npad), lambda i: (i, 0)),    # int8 adjacency row tile (streamed)
                pl.BlockSpec((npad, hpad), lambda i: (0, 0)),  # hs: constant block, VMEM-resident
                pl.BlockSpec((tm, 1), lambda i: (i, 0)),       # dinv row tile
                pl.BlockSpec((1, hpad), lambda i: (0, 0)),     # bias
            ],
            out_specs=pl.BlockSpec((tm, hpad), lambda i: (i, 0)),
        ),
        compiler_params=pltpu.CompilerParams(
            dimension_semantics=("parallel",),     # megacore sharding on v7x
            vmem_limit_bytes=int(vmem_limit),
        ),
        cost_estimate=pl.CostEstimate(
            flops=int(flops), transcendentals=0, bytes_accessed=int(bytes_accessed)),
    )(adj_i8, hs_bf16, dinv_col, bias_row)


def _gcn_fused(adj_i8, hs1_bf16, w2p, dinv_col, b1p, b2p, vmem_limit):
    """Both layers in one pallas_call with A VMEM-resident (small/medium graphs)."""
    npad, hpad = hs1_bf16.shape
    flops = 4 * npad * npad * hpad + 2 * npad * hpad * hpad
    bytes_accessed = (npad * npad + npad * hpad * 2 + hpad * hpad * 4
                      + npad * hpad * 4 + npad * 4 + 2 * hpad * 4)
    return pl.pallas_call(
        _gcn_fused_kernel,
        out_shape=jax.ShapeDtypeStruct((npad, hpad), jnp.float32),
        compiler_params=pltpu.CompilerParams(vmem_limit_bytes=int(vmem_limit)),
        cost_estimate=pl.CostEstimate(
            flops=int(flops), transcendentals=0, bytes_accessed=int(bytes_accessed)),
    )(adj_i8, hs1_bf16, w2p, dinv_col, b1p, b2p)


# ----------------------------------------------------------------------------- forward
def letter_gnn_forward(x, edge_index, batch, params, num_graphs, *, force_streamed=False):
    """LetterGNN forward. Hot aggregation path in Pallas, tiny glue in XLA."""
    x = x.astype(jnp.float32)
    edge_index = edge_index.astype(jnp.int32)
    n, f = x.shape
    w1, b1, w2, b2, wfc, bfc = params
    hdim = w1.shape[1]

    npad = _round_up(n, 128)     # rows + contraction dim of the adjacency
    hpad = _round_up(hdim, 128)  # lane-dense hidden dim

    # ---- graph structure: (A + I) built ONCE, directly as int8 (no f32 NxN intermediate;
    #      matches PyG scatter-add counts — exact up to 127 duplicate edges per pair).
    #      Degrees come from the edge list (O(E)), normalization in f32. ----
    src, dst = edge_index[0], edge_index[1]
    loop = jnp.arange(n, dtype=jnp.int32)
    src_all = jnp.concatenate([src, loop])
    dst_all = jnp.concatenate([dst, loop])
    ones_i8 = jnp.ones_like(src_all, dtype=jnp.int8)
    adj_i8 = jnp.zeros((npad, npad), jnp.int8).at[dst_all, src_all].add(ones_i8)  # A[target, source]
    deg = jnp.zeros((npad,), jnp.float32).at[dst_all].add(1.0)                    # in-deg incl. self loop
    dinv_col = jnp.where(deg > 0, jax.lax.rsqrt(deg), 0.0)[:, None]               # [npad, 1] f32

    # ---- zero-padded parameters (padded hidden columns stay exactly 0 through relu) ----
    w1p = jnp.zeros((f, hpad), jnp.float32).at[:, :hdim].set(w1)
    b1p = jnp.zeros((1, hpad), jnp.float32).at[0, :hdim].set(b1)
    w2p = jnp.zeros((hpad, hpad), jnp.float32).at[:hdim, :hdim].set(w2)
    b2p = jnp.zeros((1, hpad), jnp.float32).at[0, :hdim].set(b2)
    x_p = jnp.zeros((npad, f), jnp.float32).at[:n].set(x)

    vmem_limit = _vmem_limit_bytes()

    # ---- GCN layer 1 RHS: Dinv @ X @ W1 (tiny, done in f32 then cast) ----
    hs1 = (dinv_col * (x_p @ w1p)).astype(jnp.bfloat16)

    if (not force_streamed) and _fused_fits(npad, hpad, vmem_limit // 2):
        # A fits VMEM: one kernel, A read from HBM once, resident across BOTH layers.
        h2 = _gcn_fused(adj_i8, hs1, w2p, dinv_col, b1p, b2p, vmem_limit)
    else:
        # Large graphs: stream A row tiles (int8) per layer.
        h1 = _gcn_aggregate(adj_i8, hs1, dinv_col, b1p, vmem_limit)   # [npad, hpad] f32
        hs2 = (dinv_col * (h1 @ w2p)).astype(jnp.bfloat16)
        h2 = _gcn_aggregate(adj_i8, hs2, dinv_col, b2p, vmem_limit)   # [npad, hpad] f32

    # ---- global_mean_pool + fc (trivial, lane-sparse -> XLA wrapper) ----
    h2 = h2[:n, :hdim]
    onehot = (batch[None, :] == jnp.arange(num_graphs, dtype=batch.dtype)[:, None]
              ).astype(jnp.float32)                        # [G, N]
    counts = onehot.sum(axis=1, keepdims=True)
    pool = jnp.where(counts > 0, onehot / counts, 0.0)
    pooled = pool @ h2                                     # [G, hidden]
    return pooled @ wfc + bfc[None, :]                     # [G, num_classes]


def init_params(key, num_node_features, hidden_dim, num_classes):
    """Deterministic parameter init (shapes match LetterGNN.__init__, num_layers=2).
    Weights stored as (in, out); equivalent to PyG's Linear weight transposed."""
    k1, k2, k3 = jax.random.split(key, 3)
    w1 = jax.random.normal(k1, (num_node_features, hidden_dim), jnp.float32) * 0.1
    b1 = jnp.zeros((hidden_dim,), jnp.float32)
    w2 = jax.random.normal(k2, (hidden_dim, hidden_dim), jnp.float32) * 0.1
    b2 = jnp.zeros((hidden_dim,), jnp.float32)
    wfc = jax.random.normal(k3, (hidden_dim, num_classes), jnp.float32) * 0.1
    bfc = jnp.zeros((num_classes,), jnp.float32)
    return (w1, b1, w2, b2, wfc, bfc)


def _ring_graph(num_graphs, nodes_per_graph):
    """Deterministic bidirectional ring within each graph."""
    srcs, dsts = [], []
    for g in range(num_graphs):
        base = g * nodes_per_graph
        for i in range(nodes_per_graph):
            a = base + i
            b = base + (i + 1) % nodes_per_graph
            srcs += [a, b]
            dsts += [b, a]
    edge_index = jnp.array([srcs, dsts], dtype=jnp.int32)
    batch = jnp.repeat(jnp.arange(num_graphs, dtype=jnp.int32), nodes_per_graph)
    return edge_index, batch


if __name__ == "__main__":
    num_node_features = 8
    hidden_dim = 32
    num_classes = 4

    key = jax.random.PRNGKey(0)
    kx1, kx2, kp = jax.random.split(key, 3)
    params = init_params(kp, num_node_features, hidden_dim, num_classes)

    # ---- Example 1: 2 graphs x 8 nodes (fused path: A resident across both layers) ----
    num_graphs, nodes_per_graph = 2, 8
    n1 = num_graphs * nodes_per_graph
    x1 = jax.random.normal(kx1, (n1, num_node_features), jnp.float32)
    ei1, batch1 = _ring_graph(num_graphs, nodes_per_graph)
    out1 = letter_gnn_forward(x1, ei1, batch1, params, num_graphs)
    jax.block_until_ready(out1)
    assert out1.shape == (num_graphs, num_classes)
    assert bool(jnp.all(jnp.isfinite(out1)))

    # ---- Example 2: 2 graphs x 150 nodes; also exercise the streamed (row-tiled,
    #      multi-grid-step) path and check it agrees with the fused path. ----
    num_graphs2, nodes_per_graph2 = 2, 150
    n2 = num_graphs2 * nodes_per_graph2
    x2 = jax.random.normal(kx2, (n2, num_node_features), jnp.float32)
    ei2, batch2 = _ring_graph(num_graphs2, nodes_per_graph2)
    out_fused = letter_gnn_forward(x2, ei2, batch2, params, num_graphs2)
    out_streamed = letter_gnn_forward(x2, ei2, batch2, params, num_graphs2,
                                      force_streamed=True)
    jax.block_until_ready((out_fused, out_streamed))
    assert out_fused.shape == (num_graphs2, num_classes)
    assert bool(jnp.all(jnp.isfinite(out_fused)))
    assert bool(jnp.all(jnp.isfinite(out_streamed)))
    assert bool(jnp.allclose(out_fused, out_streamed, rtol=1e-1, atol=1e-1))

    print("KERNEL_OK")
</pallas_src>

<mosaic_0001>
module attributes {stable_mosaic.version = 11 : i64} {
  func.func @_gcn_fused_kernel(%arg0: memref<128x128xi8, #tpu.memory_space<vmem>>, %arg1: memref<128x128xbf16, #tpu.memory_space<vmem>>, %arg2: memref<128x128xf32, #tpu.memory_space<vmem>>, %arg3: memref<128x1xf32, #tpu.memory_space<vmem>>, %arg4: memref<1x128xf32, #tpu.memory_space<vmem>>, %arg5: memref<1x128xf32, #tpu.memory_space<vmem>>, %arg6: memref<128x128xf32, #tpu.memory_space<vmem>>) attributes {dimension_semantics = [], scalar_prefetch = 0 : i64, scratch_operands = 0 : i64, tpu.core_type = #tpu.core_type<tc>} {
    %c0 = arith.constant 0 : index
    %c0_0 = arith.constant 0 : index
    %0 = vector.load %arg0[%c0, %c0_0] : memref<128x128xi8, #tpu.memory_space<vmem>>, vector<128x128xi8>
    %1 = arith.sitofp %0 : vector<128x128xi8> to vector<128x128xbf16>
    %c0_1 = arith.constant 0 : index
    %c0_2 = arith.constant 0 : index
    %2 = vector.load %arg3[%c0_1, %c0_2] : memref<128x1xf32, #tpu.memory_space<vmem>>, vector<128x1xf32>
    %cst = arith.constant 0.000000e+00 : f32
    %3 = vector.broadcast %cst : f32 to vector<128x1xf32>
    %4 = arith.cmpf ogt, %2, %3 : vector<128x1xf32>
    %c0_3 = arith.constant 0 : index
    %c0_4 = arith.constant 0 : index
    %5 = vector.load %arg1[%c0_3, %c0_4] : memref<128x128xbf16, #tpu.memory_space<vmem>>, vector<128x128xbf16>
    %cst_5 = arith.constant dense<0.000000e+00> : vector<128x128xf32>
    %6 = tpu.matmul %1, %5, %cst_5 {dimension_numbers = #tpu.dot_dimension_numbers<[1], [0], [0], [1], [0, 0, 1, 1], [], []>} : vector<128x128xbf16>, vector<128x128xbf16>, vector<128x128xf32> -> vector<128x128xf32>
    %7 = vector.broadcast %2 : vector<128x1xf32> to vector<128x128xf32>
    %8 = arith.mulf %6, %7 : vector<128x128xf32>
    %c0_6 = arith.constant 0 : index
    %c0_7 = arith.constant 0 : index
    %9 = vector.load %arg4[%c0_6, %c0_7] : memref<1x128xf32, #tpu.memory_space<vmem>>, vector<1x128xf32>
    %10 = vector.broadcast %9 : vector<1x128xf32> to vector<128x128xf32>
    %11 = arith.addf %8, %10 : vector<128x128xf32>
    %cst_8 = arith.constant 0.000000e+00 : f32
    %12 = vector.broadcast %cst_8 : f32 to vector<128x128xf32>
    %13 = arith.maximumf %11, %12 : vector<128x128xf32>
    %cst_9 = arith.constant 0.000000e+00 : f32
    %14 = vector.shape_cast %4 : vector<128x1xi1> to vector<128x1xi1>
    %15 = vector.broadcast %14 : vector<128x1xi1> to vector<128x128xi1>
    %16 = vector.broadcast %cst_9 : f32 to vector<128x128xf32>
    %17 = arith.select %15, %13, %16 : vector<128x128xi1>, vector<128x128xf32>
    %18 = vector.broadcast %2 : vector<128x1xf32> to vector<128x128xf32>
    %19 = arith.mulf %18, %17 : vector<128x128xf32>
    %c0_10 = arith.constant 0 : index
    %c0_11 = arith.constant 0 : index
    %20 = vector.load %arg2[%c0_10, %c0_11] : memref<128x128xf32, #tpu.memory_space<vmem>>, vector<128x128xf32>
    %cst_12 = arith.constant dense<0.000000e+00> : vector<128x128xf32>
    %21 = tpu.matmul %19, %20, %cst_12 {dimension_numbers = #tpu.dot_dimension_numbers<[1], [0], [0], [1], [0, 0, 1, 1], [], []>} : vector<128x128xf32>, vector<128x128xf32>, vector<128x128xf32> -> vector<128x128xf32>
    %22 = arith.truncf %21 : vector<128x128xf32> to vector<128x128xbf16>
    %cst_13 = arith.constant dense<0.000000e+00> : vector<128x128xf32>
    %23 = tpu.matmul %1, %22, %cst_13 {dimension_numbers = #tpu.dot_dimension_numbers<[1], [0], [0], [1], [0, 0, 1, 1], [], []>} : vector<128x128xbf16>, vector<128x128xbf16>, vector<128x128xf32> -> vector<128x128xf32>
    %24 = vector.broadcast %2 : vector<128x1xf32> to vector<128x128xf32>
    %25 = arith.mulf %23, %24 : vector<128x128xf32>
    %c0_14 = arith.constant 0 : index
    %c0_15 = arith.constant 0 : index
    %26 = vector.load %arg5[%c0_14, %c0_15] : memref<1x128xf32, #tpu.memory_space<vmem>>, vector<1x128xf32>
    %27 = vector.broadcast %26 : vector<1x128xf32> to vector<128x128xf32>
    %28 = arith.addf %25, %27 : vector<128x128xf32>
    %cst_16 = arith.constant 0.000000e+00 : f32
    %29 = vector.broadcast %cst_16 : f32 to vector<128x128xf32>
    %30 = arith.maximumf %28, %29 : vector<128x128xf32>
    %cst_17 = arith.constant 0.000000e+00 : f32
    %31 = vector.shape_cast %4 : vector<128x1xi1> to vector<128x1xi1>
    %32 = vector.broadcast %31 : vector<128x1xi1> to vector<128x128xi1>
    %33 = vector.broadcast %cst_17 : f32 to vector<128x128xf32>
    %34 = arith.select %32, %30, %33 : vector<128x128xi1>, vector<128x128xf32>
    %c0_18 = arith.constant 0 : index
    %c0_19 = arith.constant 0 : index
    %35 = vector.load %arg6[%c0_18, %c0_19] : memref<128x128xf32, #tpu.memory_space<vmem>>, vector<128x128xf32>
    tpu.vector_store %arg6[%c0_18, %c0_19], %34 {strides = array<i32>} : memref<128x128xf32, #tpu.memory_space<vmem>>, vector<128x128xf32>,
    return
  }
}

</mosaic_0001>

<bundles_post_ra>
// kernel: tpu_custom_call.1
= control target key start
LH: loop header
LB: loop body
LE: loop exit
PB: predicated region body
PF: predicated region fallthrough
CT: control target
= control target key end

     0   :  { %11 = vsyncpa [#allocation3], 0  ;;  %s1333_s0 = inlined_call_operand.hbm [shape: s8[128,128], index: 0, kind: input, shape index: {}]   ;;  %s1334_s1 = inlined_call_operand.hbm [shape: bf16[128,128], index: 1, kind: input, shape index: {}]   ;;  %s1335_s2 = inlined_call_operand.vmem [shape: f32[128,128], index: 2, kind: input, shape index: {}]   ;;  %s1336_s3 = inlined_call_operand.vmem [shape: f32[128,1], index: 3, kind: input, shape index: {}]   ;;  %s1337_s4 = inlined_call_operand.vmem [shape: f32[1,128], index: 4, kind: input, shape index: {}]   ;;  %s1338_s5 = inlined_call_operand.vmem [shape: f32[1,128], index: 5, kind: input, shape index: {}]   ;;  %s1339_s6 = inlined_call_operand.hbm [shape: f32[128,128], index: 6, kind: output, shape index: {}]  }
   0x1   :  { %12 = vsyncpa [#allocation6], 0 }
   0x2   :  { %13 = vsyncpa [#allocation4], 0  ;;  %s18_s23 = sshll.u32 %s1333_s0, 4  ;;  %s894_s24 = smov [#allocation2]   ;;  %s19_s23 = int_to_ptr.hbm [resolvable:$true] %s18_s23 }
   0x3   :  { %s20_s25 = sshll.u32 %s894_s24, 4  ;;  %s31_s28 = sshll.u32 %s1334_s1, 4  ;;  %s21_s25 = int_to_ptr.vmem [resolvable:$true] %s20_s25  ;;  %s32_s28 = int_to_ptr.hbm [resolvable:$true] %s31_s28 }
   0x4   :  { %s895_s29 = smov 128   ;;  %s896_s30 = smov 8  }
   0x5   :  { %26 = dma.hbm_to_vmem [thread:$0]  %s19_s23, 512, %s21_s25, [#allocation3], %s895_s29, %s895_s29, %s896_s30  }
   0x6   :  { %s897_s7 = smov [#allocation5]   ;;  %s898_s9 = smov 64  }
   0x7   :  { %s33_s8 = sshll.u32 %s897_s7, 4  ;;  %s899_s0 = smov 4   ;;  %s34_s8 = int_to_ptr.vmem [resolvable:$true] %s33_s8 }
   0x8   :  { %39 = dma.hbm_to_vmem [thread:$0]  %s32_s28, 1024, %s34_s8, [#allocation6], %s898_s9, %s898_s9, %s899_s0  }
   0x9   :  { %888 = dma.done.wait [#allocation3], 512  }
   0xa   :  { %889 = vsyncadd [#allocation3], 4294966784 }
   0xb   :  { %890 = dma.done.wait [#allocation6], 1024  }
   0xc   :  { %891 = vsyncadd [#allocation6], 4294966272  ;;  %v900_v0 = vmov 0   ;;  %v101_v1 = vld [vmem:[%s1336_s3 + $0x8] sm:$0xff]  ;;  %v100_v2 = vld [vmem:[%s1336_s3] sm:$0xff]  ;;  %s717_s28 = sshll.u32 %s1339_s6, 4  ;;  %s718_s28 = int_to_ptr.hbm [resolvable:$true] %s717_s28 }
   0xd   :  { %812 = vset.pattern.permute.xlu1 %v900_v0  ;;  %811 = vset.pattern.permute.xlu0 %v900_v0  ;;  %v770_v3 = vld [vmem:[#allocation5 + $0x38] sm:$0xff]  ;;  %v102_v4 = vld [vmem:[%s1336_s3 + $0x10] sm:$0xff]  ;;  %vm117_vm0 = vcmp.gt.f32.partialorder %v101_v1, 0.0  ;;  %vm116_vm1 = vcmp.gt.f32.partialorder %v100_v2, 0.0  ;;  %v768_v6 = vld [vmem:[#allocation5 + $0x28] sm:$0xff] }
   0xe   :  { %813 = vset.pattern.permute.xlu2 %v900_v0  ;;  %252 = vperm.xlu1 %812, %v101_v1   ;;  %v769_v5 = vld [vmem:[#allocation5 + $0x30] sm:$0xff]  ;;  %vm118_vm2 = vcmp.gt.f32.partialorder %v102_v4, 0.0  ;;  %v378_v7 = vsel %vm117_vm0, 1, %v900_v0  ;;  %v377_v8 = vsel %vm116_vm1, 1, %v900_v0  ;;  %v103_v9 = vld [vmem:[%s1336_s3 + $0x18] sm:$0xff]  ;;  %v767_v11 = vld [vmem:[#allocation5 + $0x20] sm:$0xff] }
   0xf   :  { %247 = vperm.xlu0 %811, %v100_v2   ;;  %196 = vmatpush.bf16.msra.mxu0 %v770_v3  ;;  %v379_v10 = vsel %vm118_vm2, 1, %v900_v0  ;;  %vm119_vm3 = vcmp.gt.f32.partialorder %v103_v9, 0.0  ;;  %v766_v13 = vld [vmem:[#allocation5 + $0x18] sm:$0xff]  ;;  %v104_v14 = vld [vmem:[%s1336_s3 + $0x20] sm:$0xff]  ;;  %v765_v15 = vld [vmem:[#allocation5 + $0x10] sm:$0xff] }
  0x10   :  { %771 = vmatpush.bf16.msra.mxu3 %v770_v3  ;;  %257 = vperm.xlu2 %813, %v102_v4   ;;  %v380_v12 = vsel %vm119_vm3, 1, %v900_v0  ;;  %vm120_vm4 = vcmp.gt.f32.partialorder %v104_v14, 0.0  ;;  %v56_v16 = vld [vmem:[#allocation2] sm:$0xff]  ;;  %v59_v17 = vld [vmem:[#allocation2 + $0x18] sm:$0xff]  ;;  %v105_v18 = vld [vmem:[%s1336_s3 + $0x28] sm:$0xff] }
  0x11   :  { %v381_v19 = vsel %vm120_vm4, 1, %v900_v0  ;;  %vm121_vm5 = vcmp.gt.f32.partialorder %v105_v18, 0.0  ;;  %v764_v20 = vld [vmem:[#allocation5 + $0x8] sm:$0xff]  ;;  %v60_v21 = vunpack.c.0.s8 %v56_v16  ;;  %v61_v22 = vunpack.c.1.s8 %v56_v16  ;;  %v763_v26 = vld [vmem:[#allocation5] sm:$0xff]  ;;  %v106_v31 = vld [vmem:[%s1336_s3 + $0x30] sm:$0xff] }
  0x12   :  { %v72_v23 = vunpack.c.0.s8 %v59_v17  ;;  %v73_v24 = vunpack.c.1.s8 %v59_v17  ;;  %v382_v25 = vsel %vm121_vm5, 1, %v900_v0  ;;  %vm122_vm6 = vcmp.gt.f32.partialorder %v106_v31, 0.0  ;;  %v112_v32 = vld [vmem:[%s1336_s3 + $0x60] sm:$0xff]  ;;  %v107_v37 = vld [vmem:[%s1336_s3 + $0x38] sm:$0xff]  ;;  %v113_v42 = vld [vmem:[%s1336_s3 + $0x68] sm:$0xff] }
  0x13   :  { %197 = vmatpush.bf16.msra.mxu0 %v769_v5  ;;  %v76_v27 = vcvt.s32.f32 %v60_v21  ;;  %v77_v28 = vcvt.s32.f32 %v61_v22  ;;  %v383_v35 = vsel %vm122_vm6, 1, %v900_v0  ;;  %vm128_vm7 = vcmp.gt.f32.partialorder %v112_v32, 0.0  ;;  %v108_v51 = vld [vmem:[%s1336_s3 + $0x40] sm:$0xff]  ;;  %v57_v52 = vld [vmem:[#allocation2 + $0x8] sm:$0xff]  ;;  %v114_v53 = vld [vmem:[%s1336_s3 + $0x70] sm:$0xff] }
  0x14   :  { %772 = vmatpush.bf16.msra.mxu3 %v769_v5  ;;  %v88_v29 = vcvt.s32.f32 %v72_v23  ;;  %v89_v30 = vcvt.s32.f32 %v73_v24  ;;  %v389_v36 = vsel %vm128_vm7, 1, %v900_v0  ;;  %v62_v38 = vunpack.c.2.s8 %v56_v16  ;;  %v109_v60 = vld [vmem:[%s1336_s3 + $0x48] sm:$0xff]  ;;  %v115_v61 = vld [vmem:[%s1336_s3 + $0x78] sm:$0xff]  ;;  %v110_v1 = vld [vmem:[%s1336_s3 + $0x50] sm:$0xff] }
  0x15   :  { %v979_v33 = vpack.c.bf16 %v77_v28, %v76_v27  ;;  %v63_v39 = vunpack.c.3.s8 %v56_v16  ;;  %v74_v40 = vunpack.c.2.s8 %v59_v17  ;;  %v75_v41 = vunpack.c.3.s8 %v59_v17  ;;  %v111_v5 = vld [vmem:[%s1336_s3 + $0x58] sm:$0xff]  ;;  %v503_v21 = vld [vmem:[%s1335_s2 + $0x70] sm:$0xff]  ;;  %v502_v22 = vld [vmem:[%s1335_s2 + $0x68] sm:$0xff] }
  0x16   :  { %397 = vperm.xlu1 %812, %v378_v7   ;;  %v981_v34 = vpack.c.bf16 %v89_v30, %v88_v29  ;;  %v78_v43 = vcvt.s32.f32 %v62_v38  ;;  %vm129_vm8 = vcmp.gt.f32.partialorder %v113_v42, 0.0  ;;  %vm123_vm9 = vcmp.gt.f32.partialorder %v107_v37, 0.0  ;;  %v504_v17 = vld [vmem:[%s1335_s2 + $0x78] sm:$0xff]  ;;  %v501_v23 = vld [vmem:[%s1335_s2 + $0x60] sm:$0xff]  ;;  %v499_v28 = vld [vmem:[%s1335_s2 + $0x50] sm:$0xff] }
  0x17   :  { %394 = vperm.xlu0 %811, %v377_v8   ;;  %198 = vmatpush.bf16.msra.mxu0 %v768_v6  ;;  %v79_v44 = vcvt.s32.f32 %v63_v39  ;;  %v90_v45 = vcvt.s32.f32 %v74_v40  ;;  %v91_v46 = vcvt.s32.f32 %v75_v41  ;;  %v390_v47 = vsel %vm129_vm8, 1, %v900_v0  ;;  %v498_v29 = vld [vmem:[%s1335_s2 + $0x48] sm:$0xff]  ;;  %v493_v40 = vld [vmem:[%s1335_s2 + $0x20] sm:$0xff]  ;;  %v492_v41 = vld [vmem:[%s1335_s2 + $0x18] sm:$0xff] }
  0x18   :  { %773 = vmatpush.bf16.msra.mxu3 %v768_v6  ;;  %400 = vperm.xlu2 %813, %v379_v10   ;;  %v384_v48 = vsel %vm123_vm9, 1, %v900_v0  ;;  %vm124_vm10 = vcmp.gt.f32.partialorder %v108_v51, 0.0  ;;  %vm130_vm11 = vcmp.gt.f32.partialorder %v114_v53, 0.0  ;;  %v64_v55 = vunpack.c.0.s8 %v57_v52  ;;  %v494_v38 = vld [vmem:[%s1335_s2 + $0x28] sm:$0xff] }
  0x19   :  { %v995_v49 = vpack.c.bf16 %v79_v44, %v78_v43  ;;  %v997_v50 = vpack.c.bf16 %v91_v46, %v90_v45  ;;  %v385_v54 = vsel %vm124_vm10, 1, %v900_v0  ;;  %v65_v56 = vunpack.c.1.s8 %v57_v52  ;;  %505 = vmatpush.msra.mxu1 %v504_v17  ;;  %v491_v44 = vld [vmem:[%s1335_s2 + $0x10] sm:$0xff]  ;;  %v490_v45 = vld [vmem:[%s1335_s2 + $0x8] sm:$0xff]  ;;  %v489_v46 = vld [vmem:[%s1335_s2] sm:$0xff] }
  0x1a   :  { %v391_v57 = vsel %vm130_vm11, 1, %v900_v0  ;;  %v80_v58 = vcvt.s32.f32 %v64_v55  ;;  %vm125_vm12 = vcmp.gt.f32.partialorder %v109_v60, 0.0  ;;  %vm131_vm13 = vcmp.gt.f32.partialorder %v115_v61, 0.0 }
  0x1b   :  { %199 = vmatpush.bf16.msra.mxu0 %v767_v11  ;;  %v81_v59 = vcvt.s32.f32 %v65_v56  ;;  %v386_v63 = vsel %vm125_vm12, 1, %v900_v0  ;;  %vm126_vm14 = vcmp.gt.f32.partialorder %v110_v1, 0.0  ;;  %v392_v2 = vsel %vm131_vm13, 1, %v900_v0  ;;  %506 = vmatpush.msra.mxu1 %v503_v21 }
  0x1c   :  { %774 = vmatpush.bf16.msra.mxu3 %v767_v11  ;;  %v66_v3 = vunpack.c.2.s8 %v57_v52  ;;  %v67_v4 = vunpack.c.3.s8 %v57_v52  ;;  %v387_v6 = vsel %vm126_vm14, 1, %v900_v0  ;;  %vm127_vm15 = vcmp.gt.f32.partialorder %v111_v5, 0.0  ;;  %v58_v11 = vld [vmem:[#allocation2 + $0x10] sm:$0xff] }
  0x1d   :  { %v1015_v62 = vpack.c.bf16 %v81_v59, %v80_v58  ;;  %507 = vmatpush.msra.mxu1 %v502_v22 }
  0x1e   :  { %403 = vperm.xlu1 %812, %v380_v12   ;;  %v82_v7 = vcvt.s32.f32 %v66_v3  ;;  %v83_v8 = vcvt.s32.f32 %v67_v4  ;;  %v68_v12 = vunpack.c.0.s8 %v58_v11 }
  0x1f   :  { %262 = vperm.xlu0 %811, %v103_v9   ;;  %200 = vmatpush.bf16.msra.mxu0 %v766_v13  ;;  %v388_v9 = vsel %vm127_vm15, 1, %v900_v0  ;;  %v70_v0 = vunpack.c.2.s8 %v58_v11 }
  0x20   :  { %775 = vmatpush.bf16.msra.mxu3 %v766_v13  ;;  %267 = vperm.xlu2 %813, %v104_v14   ;;  %v1028_v10 = vpack.c.bf16 %v83_v8, %v82_v7  ;;  %v69_v13 = vunpack.c.1.s8 %v58_v11  ;;  %v84_v14 = vcvt.s32.f32 %v68_v12 }
  0x21   :  { %508 = vmatpush.msra.mxu1 %v501_v23 }
  0x23   :  { %201 = vmatpush.bf16.msra.mxu0 %v765_v15 }
  0x24   :  { %776 = vmatpush.bf16.msra.mxu3 %v765_v15  ;;  %v85_v15 = vcvt.s32.f32 %v69_v13 }
  0x26   :  { %272 = vperm.xlu1 %812, %v105_v18   ;;  %v1031_v16 = vpack.c.bf16 %v85_v15, %v84_v14  ;;  %v71_v18 = vunpack.c.3.s8 %v58_v11 }
  0x27   :  { %406 = vperm.xlu0 %811, %v381_v19   ;;  %202 = vmatpush.bf16.msra.mxu0 %v764_v20  ;;  %v86_v19 = vcvt.s32.f32 %v70_v0 }
  0x28   :  { %777 = vmatpush.bf16.msra.mxu3 %v764_v20  ;;  %409 = vperm.xlu2 %813, %v382_v25   ;;  %v87_v20 = vcvt.s32.f32 %v71_v18  ;;  %v500_v25 = vld [vmem:[%s1335_s2 + $0x58] sm:$0xff] }
  0x29   :  { %509 = vmatpush.msra.mxu1 %v500_v25 }
  0x2a   :  { %v1046_v24 = vpack.c.bf16 %v87_v20, %v86_v19 }
  0x2b   :  { %203 = vmatpush.bf16.msra.mxu0 %v763_v26  ;;  %510 = vmatpush.msra.mxu1 %v499_v28 }
  0x2c   :  { %778 = vmatpush.bf16.msra.mxu3 %v763_v26 }
  0x2d   :  { %511 = vmatpush.msra.mxu1 %v498_v29 }
  0x2e   :  { %307 = vperm.xlu1 %812, %v112_v32   ;;  %204 = vmatmul.bf16.vlgmr.msra.gmra.mxu0 %v979_v33  ;;  %v496_v32 = vld [vmem:[%s1335_s2 + $0x38] sm:$0xff] }
  0x2f   :  { %277 = vperm.xlu0 %811, %v106_v31   ;;  %234 = vmatmul.bf16.vlgmr.msra.gmra.mxu3 %v981_v34  ;;  %v497_v31 = vld [vmem:[%s1335_s2 + $0x40] sm:$0xff] }
  0x30   :  { %412 = vperm.xlu2 %813, %v383_v35   ;;  %779 = vmatpush.msrb.mxu3 %v504_v17 }
  0x31   :  { %512 = vmatpush.msra.mxu1 %v497_v31 }
  0x32   :  { %780 = vmatpush.msrb.mxu3 %v503_v21 }
  0x33   :  { %513 = vmatpush.msra.mxu1 %v496_v32 }
  0x34   :  { %781 = vmatpush.msrb.mxu3 %v502_v22 }
  0x36   :  { %282 = vperm.xlu1 %812, %v107_v37   ;;  %782 = vmatpush.msrb.mxu3 %v501_v23  ;;  %v495_v37 = vld [vmem:[%s1335_s2 + $0x30] sm:$0xff] }
  0x37   :  { %430 = vperm.xlu0 %811, %v389_v36   ;;  %514 = vmatpush.msra.mxu1 %v495_v37 }
  0x38   :  { %312 = vperm.xlu2 %813, %v113_v42   ;;  %783 = vmatpush.msrb.mxu3 %v500_v25 }
  0x39   :  { %515 = vmatpush.msra.mxu1 %v494_v38 }
  0x3a   :  { %784 = vmatpush.msrb.mxu3 %v499_v28 }
  0x3b   :  { %516 = vmatpush.msra.mxu1 %v493_v40 }
  0x3c   :  { %785 = vmatpush.msrb.mxu3 %v498_v29 }
  0x3d   :  { %517 = vmatpush.msra.mxu1 %v492_v41 }
  0x3e   :  { %433 = vperm.xlu1 %812, %v390_v47   ;;  %209 = vmatmul.bf16.gmra.mxu0 %v995_v49 }
  0x3f   :  { %415 = vperm.xlu0 %811, %v384_v48   ;;  %239 = vmatmul.bf16.gmra.mxu3 %v997_v50 }
  0x40   :  { %287 = vperm.xlu2 %813, %v108_v51   ;;  %786 = vmatpush.msrb.mxu3 %v497_v31 }
  0x41   :  { %518 = vmatpush.msra.mxu1 %v491_v44 }
  0x42   :  { %787 = vmatpush.msrb.mxu3 %v496_v32 }
  0x43   :  { %519 = vmatpush.msra.mxu1 %v490_v45 }
  0x44   :  { %788 = vmatpush.msrb.mxu3 %v495_v37 }
  0x45   :  { %520 = vmatpush.msra.mxu1 %v489_v46 }
  0x46   :  { %418 = vperm.xlu1 %812, %v385_v54   ;;  %789 = vmatpush.msrb.mxu3 %v494_v38 }
  0x47   :  { %317 = vperm.xlu0 %811, %v114_v53  }
  0x48   :  { %436 = vperm.xlu2 %813, %v391_v57   ;;  %790 = vmatpush.msrb.mxu3 %v493_v40  ;;  %v1120_v57 = vld [vmem:[%s1337_s4] ss:$0 sm:$0xff] }
  0x4a   :  { %791 = vmatpush.msrb.mxu3 %v492_v41 }
  0x4c   :  { %792 = vmatpush.msrb.mxu3 %v491_v44 }
  0x4e   :  { %322 = vperm.xlu1 %812, %v115_v61   ;;  %214 = vmatmul.bf16.gmra.mxu0 %v1015_v62 }
  0x4f   :  { %292 = vperm.xlu0 %811, %v109_v60   ;;  %793 = vmatpush.msrb.mxu3 %v490_v45 }
  0x50   :  { %421 = vperm.xlu2 %813, %v386_v63  }
  0x51   :  { %794 = vmatpush.msrb.mxu3 %v489_v46 }
  0x56   :  { %297 = vperm.xlu1 %812, %v110_v1  }
  0x57   :  { %439 = vperm.xlu0 %811, %v392_v2  }
  0x58   :  { %424 = vperm.xlu2 %813, %v387_v6  }
  0x5e   :  { %427 = vperm.xlu1 %812, %v388_v9   ;;  %219 = vmatmul.bf16.gmra.mxu0 %v1028_v10 }
  0x5f   :  { %302 = vperm.xlu0 %811, %v111_v5  }
  0x6a   :  { %v1062_v30 = vpop.permute.xlu2 %257 }
  0x6e   :  { %224 = vmatmul.bf16.gmra.mxu0 %v1031_v16 }
  0x72   :  { %v1080_v39 = vpop.permute.xlu2 %400 }
  0x73   :  { %vm443_vm4 = vcmp.eq.s32.totalorder %v1080_v39, 1 }
  0x7a   :  { %v1101_v47 = vpop.permute.xlu2 %267 }
  0x7e   :  { %229 = vmatmul.bf16.gmra.mxu0 %v1046_v24 }
  0x80   :  { %v1052_v26 = vpop.permute.xlu1 %252 }
  0x81   :  { %v1054_v27 = vpop.permute.xlu0 %247 }
  0x82   :  { %v1107_v52 = vpop.permute.xlu2 %409 }
  0x83   :  { %vm446_vm9 = vcmp.eq.s32.totalorder %v1107_v52, 1 }
  0x88   :  { %v1070_v35 = vpop.permute.xlu1 %397 }
  0x89   :  { %v1072_v36 = vpop.permute.xlu0 %394  ;;  %vm442_vm2 = vcmp.eq.s32.totalorder %v1070_v35, 1 }
  0x8a   :  { %v1115_v56 = vpop.permute.xlu2 %412  ;;  %vm441_vm0 = vcmp.eq.s32.totalorder %v1072_v36, 1 }
  0x8b   :  { %vm447_vm10 = vcmp.eq.s32.totalorder %v1115_v56, 1 }
  0x90   :  { %v1088_v42 = vpop.permute.xlu1 %403 }
  0x91   :  { %v1090_v43 = vpop.permute.xlu0 %262  ;;  %vm444_vm6 = vcmp.eq.s32.totalorder %v1088_v42, 1 }
  0x92   :  { %v1129_v3 = vpop.permute.xlu2 %312 }
  0x98   :  { %v1103_v48 = vpop.permute.xlu1 %272 }
  0x99   :  { %v1105_v51 = vpop.permute.xlu0 %406 }
  0x9a   :  { %v1151_v23 = vpop.permute.xlu2 %287  ;;  %vm445_vm8 = vcmp.eq.s32.totalorder %v1105_v51, 1 }
  0xa0   :  { %v1111_v54 = vpop.permute.xlu1 %307 }
  0xa1   :  { %v1109_v53 = vpop.permute.xlu0 %277 }
  0xa8   :  { %v1122_v58 = vpop.permute.xlu1 %282 }
  0xa9   :  { %v1113_v55 = vpop.permute.xlu0 %430 }
  0xaa   :  { %vm453_vm1 = vcmp.eq.s32.totalorder %v1113_v55, 1 }
  0xab   :  { %v205_v59 = vpop.f32.mrf.mxu0 }
  0xac   :  { %v325_v60 = vmul.f32 %v1054_v27, %v205_v59 }
  0xae   :  { %v345_v61 = vadd.f32 %v1120_v57, %v325_v60 }
  0xb0   :  { %v361_v1 = vmax.f32 %v345_v61, 0.0  ;;  %v1137_v11 = vpop.permute.xlu1 %433 }
  0xb1   :  { %v1126_v63 = vpop.permute.xlu0 %415  ;;  %vm454_vm3 = vcmp.eq.s32.totalorder %v1137_v11, 1 }
  0xb2   :  { %v235_v2 = vpop.f32.mrf.mxu3  ;;  %v457_v5 = vsel %vm441_vm0, %v361_v1, 0.0  ;;  %vm448_vm11 = vcmp.eq.s32.totalorder %v1126_v63, 1 }
  0xb3   :  { %v337_v4 = vmul.f32 %v1111_v54, %v235_v2  ;;  %v207_v6 = vpop.f32.mrf.mxu0  ;;  %v473_v7 = vmul.f32 %v457_v5, %v1054_v27  ;;  %v1171_v2 = vpop.permute.xlu2 %436 }
  0xb4   :  { %v326_v9 = vmul.f32 %v1052_v26, %v207_v6  ;;  %vm455_vm5 = vcmp.eq.s32.totalorder %v1171_v2, 1 }
  0xb5   :  { %v357_v8 = vadd.f32 %v1120_v57, %v337_v4  ;;  %521 = vmatmul.f32.vlgmr.msra.gmra.mxu1 %v473_v7 }
  0xb6   :  { %v346_v13 = vadd.f32 %v1120_v57, %v326_v9 }
  0xb7   :  { %v373_v12 = vmax.f32 %v357_v8, 0.0 }
  0xb8   :  { %v362_v14 = vmax.f32 %v346_v13, 0.0  ;;  %v1157_v32 = vpop.permute.xlu1 %418 }
  0xb9   :  { %v1141_v15 = vpop.permute.xlu0 %317  ;;  %v469_v17 = vsel %vm453_vm1, %v373_v12, 0.0  ;;  %vm449_vm12 = vcmp.eq.s32.totalorder %v1157_v32, 1 }
  0xba   :  { %v237_v0 = vpop.f32.mrf.mxu3  ;;  %v485_v18 = vmul.f32 %v469_v17, %v1111_v54  ;;  %v458_v20 = vsel %vm442_vm2, %v362_v14, 0.0 }
  0xbb   :  { %v338_v19 = vmul.f32 %v1129_v3, %v237_v0  ;;  %v210_v21 = vpop.f32.mrf.mxu0  ;;  %v474_v22 = vmul.f32 %v458_v20, %v1052_v26 }
  0xbc   :  { %557 = vmatmul.f32.vlgmr.msrb.gmra.mxu3 %v485_v18  ;;  %v327_v28 = vmul.f32 %v1062_v30, %v210_v21 }
  0xbd   :  { %v358_v25 = vadd.f32 %v1120_v57, %v338_v19  ;;  %524 = vmatmul.f32.gmra.mxu1 %v474_v22 }
  0xbe   :  { %v347_v31 = vadd.f32 %v1120_v57, %v327_v28 }
  0xbf   :  { %v374_v29 = vmax.f32 %v358_v25, 0.0 }
  0xc0   :  { %v363_v37 = vmax.f32 %v347_v31, 0.0  ;;  %v1178_v8 = vpop.permute.xlu1 %322 }
  0xc1   :  { %v470_v38 = vsel %vm454_vm3, %v374_v29, 0.0  ;;  %v1163_v44 = vpop.permute.xlu0 %292 }
  0xc2   :  { %v240_v40 = vpop.f32.mrf.mxu3  ;;  %v486_v41 = vmul.f32 %v470_v38, %v1129_v3  ;;  %v459_v46 = vsel %vm443_vm4, %v363_v37, 0.0 }
  0xc3   :  { %v339_v45 = vmul.f32 %v1141_v15, %v240_v40  ;;  %v212_v59 = vpop.f32.mrf.mxu0  ;;  %v475_v60 = vmul.f32 %v459_v46, %v1062_v30 }
  0xc4   :  { %560 = vmatmul.f32.gmra.mxu3 %v486_v41  ;;  %v328_v1 = vmul.f32 %v1090_v43, %v212_v59 }
  0xc5   :  { %v359_v61 = vadd.f32 %v1120_v57, %v339_v45  ;;  %527 = vmatmul.f32.gmra.mxu1 %v475_v60 }
  0xc6   :  { %v348_v5 = vadd.f32 %v1120_v57, %v328_v1 }
  0xc7   :  { %v375_v4 = vmax.f32 %v359_v61, 0.0 }
  0xc8   :  { %v364_v6 = vmax.f32 %v348_v5, 0.0 }
  0xc9   :  { %v471_v7 = vsel %vm455_vm5, %v375_v4, 0.0  ;;  %v1185_v18 = vpop.permute.xlu0 %439 }
  0xca   :  { %v242_v9 = vpop.f32.mrf.mxu3  ;;  %v487_v12 = vmul.f32 %v471_v7, %v1141_v15  ;;  %v460_v14 = vsel %vm444_vm6, %v364_v6, 0.0  ;;  %vm456_vm7 = vcmp.eq.s32.totalorder %v1185_v18, 1 }
  0xcb   :  { %v340_v13 = vmul.f32 %v1178_v8, %v242_v9  ;;  %v215_v17 = vpop.f32.mrf.mxu0  ;;  %v476_v0 = vmul.f32 %v460_v14, %v1090_v43 }
  0xcc   :  { %563 = vmatmul.f32.gmra.mxu3 %v487_v12  ;;  %v329_v20 = vmul.f32 %v1101_v47, %v215_v17 }
  0xcd   :  { %v360_v19 = vadd.f32 %v1120_v57, %v340_v13  ;;  %530 = vmatmul.f32.gmra.mxu1 %v476_v0 }
  0xce   :  { %v349_v22 = vadd.f32 %v1120_v57, %v329_v20 }
  0xcf   :  { %v376_v21 = vmax.f32 %v360_v19, 0.0 }
  0xd0   :  { %v365_v25 = vmax.f32 %v349_v22, 0.0 }
  0xd1   :  { %v472_v28 = vsel %vm456_vm7, %v376_v21, 0.0 }
  0xd2   :  { %v488_v29 = vmul.f32 %v472_v28, %v1178_v8  ;;  %v461_v31 = vsel %vm445_vm8, %v365_v25, 0.0 }
  0xd3   :  { %v217_v37 = vpop.f32.mrf.mxu0  ;;  %v477_v38 = vmul.f32 %v461_v31, %v1101_v47 }
  0xd4   :  { %566 = vmatmul.f32.gmra.mxu3 %v488_v29  ;;  %v330_v40 = vmul.f32 %v1103_v48, %v217_v37  ;;  %v1222_v29 = vpop.permute.xlu2 %421 }
  0xd5   :  { %533 = vmatmul.f32.gmra.mxu1 %v477_v38  ;;  %vm450_vm13 = vcmp.eq.s32.totalorder %v1222_v29, 1 }
  0xd6   :  { %v350_v41 = vadd.f32 %v1120_v57, %v330_v40 }
  0xd8   :  { %v366_v45 = vmax.f32 %v350_v41, 0.0  ;;  %v1229_v41 = vpop.permute.xlu1 %297 }
  0xda   :  { %v462_v46 = vsel %vm446_vm9, %v366_v45, 0.0 }
  0xdb   :  { %v220_v59 = vpop.f32.mrf.mxu0  ;;  %v478_v60 = vmul.f32 %v462_v46, %v1103_v48 }
  0xdc   :  { %v331_v61 = vmul.f32 %v1109_v53, %v220_v59 }
  0xdd   :  { %536 = vmatmul.f32.gmra.mxu1 %v478_v60  ;;  %v1233_v60 = vpop.permute.xlu2 %424 }
  0xde   :  { %v351_v1 = vadd.f32 %v1120_v57, %v331_v61  ;;  %vm451_vm14 = vcmp.eq.s32.totalorder %v1233_v60, 1 }
  0xe0   :  { %v367_v4 = vmax.f32 %v351_v1, 0.0 }
  0xe2   :  { %v463_v5 = vsel %vm447_vm10, %v367_v4, 0.0 }
  0xe3   :  { %v222_v6 = vpop.f32.mrf.mxu0  ;;  %v479_v7 = vmul.f32 %v463_v5, %v1109_v53  ;;  %v1239_v5 = vpop.permute.xlu0 %302 }
  0xe4   :  { %v332_v9 = vmul.f32 %v1122_v58, %v222_v6 }
  0xe5   :  { %539 = vmatmul.f32.gmra.mxu1 %v479_v7 }
  0xe6   :  { %v352_v12 = vadd.f32 %v1120_v57, %v332_v9 }
  0xe8   :  { %v368_v13 = vmax.f32 %v352_v12, 0.0  ;;  %v1243_v12 = vpop.permute.xlu1 %427 }
  0xe9   :  { %vm452_vm15 = vcmp.eq.s32.totalorder %v1243_v12, 1 }
  0xea   :  { %v464_v14 = vsel %vm448_vm11, %v368_v13, 0.0 }
  0xeb   :  { %v225_v17 = vpop.f32.mrf.mxu0  ;;  %v480_v0 = vmul.f32 %v464_v14, %v1122_v58 }
  0xec   :  { %v333_v19 = vmul.f32 %v1151_v23, %v225_v17 }
  0xed   :  { %542 = vmatmul.f32.gmra.mxu1 %v480_v0 }
  0xee   :  { %v353_v20 = vadd.f32 %v1120_v57, %v333_v19 }
  0xf0   :  { %v369_v21 = vmax.f32 %v353_v20, 0.0 }
  0xf2   :  { %v465_v22 = vsel %vm449_vm12, %v369_v21, 0.0 }
  0xf3   :  { %v227_v25 = vpop.f32.mrf.mxu0  ;;  %v481_v28 = vmul.f32 %v465_v22, %v1151_v23 }
  0xf4   :  { %v334_v31 = vmul.f32 %v1163_v44, %v227_v25 }
  0xf5   :  { %545 = vmatmul.f32.gmra.mxu1 %v481_v28 }
  0xf6   :  { %v354_v37 = vadd.f32 %v1120_v57, %v334_v31 }
  0xf8   :  { %v370_v38 = vmax.f32 %v354_v37, 0.0 }
  0xfa   :  { %v466_v40 = vsel %vm450_vm13, %v370_v38, 0.0 }
  0xfb   :  { %v230_v45 = vpop.f32.mrf.mxu0  ;;  %v482_v46 = vmul.f32 %v466_v40, %v1163_v44 }
  0xfc   :  { %v335_v59 = vmul.f32 %v1229_v41, %v230_v45 }
  0xfd   :  { %548 = vmatmul.f32.gmra.mxu1 %v482_v46 }
  0xfe   :  { %v355_v61 = vadd.f32 %v1120_v57, %v335_v59 }
 0x100   :  { %v371_v1 = vmax.f32 %v355_v61, 0.0 }
 0x102   :  { %v467_v4 = vsel %vm451_vm14, %v371_v1, 0.0 }
 0x103   :  { %v232_v6 = vpop.f32.mrf.mxu0  ;;  %v483_v7 = vmul.f32 %v467_v4, %v1229_v41 }
 0x104   :  { %v336_v9 = vmul.f32 %v1239_v5, %v232_v6 }
 0x105   :  { %551 = vmatmul.f32.gmra.mxu1 %v483_v7 }
 0x106   :  { %v356_v13 = vadd.f32 %v1120_v57, %v336_v9 }
 0x108   :  { %v372_v14 = vmax.f32 %v356_v13, 0.0 }
 0x10a   :  { %v468_v17 = vsel %vm452_vm15, %v372_v14, 0.0 }
 0x10b   :  { %v484_v0 = vmul.f32 %v468_v17, %v1239_v5 }
 0x10d   :  { %554 = vmatmul.f32.gmra.mxu1 %v484_v0 }
 0x132   :  { %v522_v19 = vpop.f32.mrf.mxu1 }
 0x13a   :  { %v525_v20 = vpop.f32.mrf.mxu1 }
 0x13b   :  { %v570_v21 = vpack.c.bf16 %v525_v20, %v522_v19  ;;  %v1261_v19 = vld [vmem:[%s1338_s5] ss:$0 sm:$0xff]  ;;  %s901_s5 = smov [#allocation7]  }
 0x13c   :  { %s715_s25 = sshll.u32 %s901_s5, 4  ;;  %s716_s25 = int_to_ptr.vmem [resolvable:$true] %s715_s25 }
 0x13f   :  { %v558_v22 = vpop.f32.mrf.mxu3 }
 0x142   :  { %v528_v25 = vpop.f32.mrf.mxu1 }
 0x147   :  { %v561_v28 = vpop.f32.mrf.mxu3 }
 0x148   :  { %v576_v59 = vpack.c.bf16 %v561_v28, %v558_v22 }
 0x14a   :  { %v531_v31 = vpop.f32.mrf.mxu1 }
 0x14b   :  { %v571_v37 = vpack.c.bf16 %v531_v31, %v528_v25 }
 0x14f   :  { %v564_v38 = vpop.f32.mrf.mxu3 }
 0x152   :  { %v534_v40 = vpop.f32.mrf.mxu1 }
 0x157   :  { %v567_v57 = vpop.f32.mrf.mxu3 }
 0x158   :  { %v577_v45 = vpack.c.bf16 %v567_v57, %v564_v38 }
 0x15a   :  { %578 = vmatpush.bf16.msra.mxu2 %v577_v45  ;;  %795 = vmatpush.bf16.msra.mxu3 %v577_v45  ;;  %v537_v46 = vpop.f32.mrf.mxu1 }
 0x15b   :  { %v572_v0 = vpack.c.bf16 %v537_v46, %v534_v40 }
 0x15e   :  { %579 = vmatpush.bf16.msra.mxu2 %v576_v59  ;;  %796 = vmatpush.bf16.msra.mxu3 %v576_v59 }
 0x162   :  { %v540_v61 = vpop.f32.mrf.mxu1 }
 0x16a   :  { %v543_v1 = vpop.f32.mrf.mxu1 }
 0x16b   :  { %v573_v17 = vpack.c.bf16 %v543_v1, %v540_v61 }
 0x172   :  { %v546_v4 = vpop.f32.mrf.mxu1 }
 0x17a   :  { %v549_v6 = vpop.f32.mrf.mxu1 }
 0x17b   :  { %v574_v14 = vpack.c.bf16 %v549_v6, %v546_v4 }
 0x182   :  { %v552_v7 = vpop.f32.mrf.mxu1 }
 0x18a   :  { %v555_v9 = vpop.f32.mrf.mxu1 }
 0x18b   :  { %v575_v13 = vpack.c.bf16 %v555_v9, %v552_v7 }
 0x18d   :  { %580 = vmatpush.bf16.msra.mxu2 %v575_v13  ;;  %797 = vmatpush.bf16.msra.mxu3 %v575_v13 }
 0x191   :  { %581 = vmatpush.bf16.msra.mxu2 %v574_v14  ;;  %798 = vmatpush.bf16.msra.mxu3 %v574_v14 }
 0x195   :  { %582 = vmatpush.bf16.msra.mxu2 %v573_v17  ;;  %799 = vmatpush.bf16.msra.mxu3 %v573_v17 }
 0x199   :  { %583 = vmatpush.bf16.msra.mxu2 %v572_v0  ;;  %800 = vmatpush.bf16.msra.mxu3 %v572_v0 }
 0x19d   :  { %584 = vmatpush.bf16.msra.mxu2 %v571_v37  ;;  %801 = vmatpush.bf16.msra.mxu3 %v571_v37 }
 0x1a1   :  { %585 = vmatpush.bf16.msra.mxu2 %v570_v21  ;;  %802 = vmatpush.bf16.msra.mxu3 %v570_v21 }
 0x1a4   :  { %586 = vmatmul.bf16.vlgmr.msra.gmra.mxu2 %v979_v33  ;;  %616 = vmatmul.bf16.vlgmr.msra.gmra.mxu3 %v981_v34 }
 0x1b4   :  { %591 = vmatmul.bf16.gmra.mxu2 %v995_v49  ;;  %621 = vmatmul.bf16.gmra.mxu3 %v997_v50 }
 0x1c4   :  { %596 = vmatmul.bf16.gmra.mxu2 %v1015_v62 }
 0x1d4   :  { %601 = vmatmul.bf16.gmra.mxu2 %v1028_v10 }
 0x1e4   :  { %606 = vmatmul.bf16.gmra.mxu2 %v1031_v16 }
 0x1f4   :  { %611 = vmatmul.bf16.gmra.mxu2 %v1046_v24 }
 0x227   :  { %v587_v33 = vpop.f32.mrf.mxu2  ;;  %v617_v20 = vpop.f32.mrf.mxu3 }
 0x228   :  { %v627_v34 = vmul.f32 %v587_v33, %v1054_v27  ;;  %v639_v49 = vmul.f32 %v617_v20, %v1111_v54 }
 0x22a   :  { %v647_v50 = vadd.f32 %v1261_v19, %v627_v34  ;;  %v659_v62 = vadd.f32 %v1261_v19, %v639_v49 }
 0x22c   :  { %v663_v10 = vmax.f32 %v647_v50, 0.0  ;;  %v675_v21 = vmax.f32 %v659_v62, 0.0 }
 0x22e   :  { %v679_v16 = vsel %vm441_vm0, %v663_v10, 0.0  ;;  %v691_v24 = vsel %vm453_vm1, %v675_v21, 0.0 }
 0x22f   :  { %695 = vst [vmem:[#allocation7] sm:$0xff] %v679_v16  ;;  %v589_v22 = vpop.f32.mrf.mxu2  ;;  %v619_v25 = vpop.f32.mrf.mxu3 }
 0x230   :  { %707 = vst [vmem:[#allocation7 + $0x60] sm:$0xff] %v691_v24  ;;  %v628_v27 = vmul.f32 %v589_v22, %v1052_v26  ;;  %v640_v54 = vmul.f32 %v619_v25, %v1129_v3 }
 0x232   :  { %v648_v28 = vadd.f32 %v1261_v19, %v628_v27  ;;  %v660_v31 = vadd.f32 %v1261_v19, %v640_v54 }
 0x234   :  { %v664_v37 = vmax.f32 %v648_v28, 0.0  ;;  %v676_v38 = vmax.f32 %v660_v31, 0.0 }
 0x236   :  { %v680_v36 = vsel %vm442_vm2, %v664_v37, 0.0  ;;  %v692_v55 = vsel %vm454_vm3, %v676_v38, 0.0 }
 0x237   :  { %696 = vst [vmem:[#allocation7 + $0x8] sm:$0xff] %v680_v36  ;;  %v592_v40 = vpop.f32.mrf.mxu2  ;;  %v622_v57 = vpop.f32.mrf.mxu3 }
 0x238   :  { %708 = vst [vmem:[#allocation7 + $0x68] sm:$0xff] %v692_v55  ;;  %v629_v26 = vmul.f32 %v592_v40, %v1062_v30  ;;  %v641_v3 = vmul.f32 %v622_v57, %v1141_v15 }
 0x23a   :  { %v649_v45 = vadd.f32 %v1261_v19, %v629_v26  ;;  %v661_v46 = vadd.f32 %v1261_v19, %v641_v3 }
 0x23c   :  { %v665_v59 = vmax.f32 %v649_v45, 0.0  ;;  %v677_v61 = vmax.f32 %v661_v46, 0.0 }
 0x23e   :  { %v681_v35 = vsel %vm443_vm4, %v665_v59, 0.0  ;;  %v693_v11 = vsel %vm455_vm5, %v677_v61, 0.0 }
 0x23f   :  { %697 = vst [vmem:[#allocation7 + $0x10] sm:$0xff] %v681_v35  ;;  %v594_v1 = vpop.f32.mrf.mxu2  ;;  %v624_v4 = vpop.f32.mrf.mxu3 }
 0x240   :  { %709 = vst [vmem:[#allocation7 + $0x70] sm:$0xff] %v693_v11  ;;  %v630_v30 = vmul.f32 %v594_v1, %v1090_v43  ;;  %v642_v15 = vmul.f32 %v624_v4, %v1178_v8 }
 0x242   :  { %v650_v6 = vadd.f32 %v1261_v19, %v630_v30  ;;  %v662_v7 = vadd.f32 %v1261_v19, %v642_v15 }
 0x244   :  { %v666_v9 = vmax.f32 %v650_v6, 0.0  ;;  %v678_v13 = vmax.f32 %v662_v7, 0.0 }
 0x246   :  { %v682_v39 = vsel %vm444_vm6, %v666_v9, 0.0  ;;  %v694_v2 = vsel %vm456_vm7, %v678_v13, 0.0 }
 0x247   :  { %698 = vst [vmem:[#allocation7 + $0x18] sm:$0xff] %v682_v39  ;;  %v597_v14 = vpop.f32.mrf.mxu2 }
 0x248   :  { %710 = vst [vmem:[#allocation7 + $0x78] sm:$0xff] %v694_v2  ;;  %v631_v17 = vmul.f32 %v597_v14, %v1101_v47 }
 0x24a   :  { %v651_v43 = vadd.f32 %v1261_v19, %v631_v17 }
 0x24c   :  { %v667_v8 = vmax.f32 %v651_v43, 0.0 }
 0x24e   :  { %v683_v0 = vsel %vm445_vm8, %v667_v8, 0.0 }
 0x24f   :  { %699 = vst [vmem:[#allocation7 + $0x20] sm:$0xff] %v683_v0  ;;  %v599_v33 = vpop.f32.mrf.mxu2 }
 0x250   :  { %v632_v20 = vmul.f32 %v599_v33, %v1103_v48 }
 0x252   :  { %v652_v42 = vadd.f32 %v1261_v19, %v632_v20 }
 0x254   :  { %v668_v34 = vmax.f32 %v652_v42, 0.0 }
 0x256   :  { %v684_v18 = vsel %vm446_vm9, %v668_v34, 0.0 }
 0x257   :  { %700 = vst [vmem:[#allocation7 + $0x28] sm:$0xff] %v684_v18  ;;  %v602_v49 = vpop.f32.mrf.mxu2 }
 0x258   :  { %v633_v47 = vmul.f32 %v602_v49, %v1109_v53 }
 0x25a   :  { %v653_v50 = vadd.f32 %v1261_v19, %v633_v47 }
 0x25c   :  { %v669_v62 = vmax.f32 %v653_v50, 0.0 }
 0x25e   :  { %v685_v51 = vsel %vm447_vm10, %v669_v62, 0.0 }
 0x25f   :  { %701 = vst [vmem:[#allocation7 + $0x30] sm:$0xff] %v685_v51  ;;  %v604_v10 = vpop.f32.mrf.mxu2 }
 0x260   :  { %v634_v48 = vmul.f32 %v604_v10, %v1122_v58 }
 0x262   :  { %v654_v21 = vadd.f32 %v1261_v19, %v634_v48 }
 0x264   :  { %v670_v16 = vmax.f32 %v654_v21, 0.0 }
 0x266   :  { %v686_v52 = vsel %vm448_vm11, %v670_v16, 0.0 }
 0x267   :  { %702 = vst [vmem:[#allocation7 + $0x38] sm:$0xff] %v686_v52  ;;  %v607_v24 = vpop.f32.mrf.mxu2 }
 0x268   :  { %v635_v53 = vmul.f32 %v607_v24, %v1151_v23 }
 0x26a   :  { %v655_v22 = vadd.f32 %v1261_v19, %v635_v53 }
 0x26c   :  { %v671_v25 = vmax.f32 %v655_v22, 0.0 }
 0x26e   :  { %v687_v56 = vsel %vm449_vm12, %v671_v25, 0.0 }
 0x26f   :  { %703 = vst [vmem:[#allocation7 + $0x40] sm:$0xff] %v687_v56  ;;  %v609_v27 = vpop.f32.mrf.mxu2 }
 0x270   :  { %v636_v58 = vmul.f32 %v609_v27, %v1163_v44 }
 0x272   :  { %v656_v54 = vadd.f32 %v1261_v19, %v636_v58 }
 0x274   :  { %v672_v28 = vmax.f32 %v656_v54, 0.0 }
 0x276   :  { %v688_v63 = vsel %vm450_vm13, %v672_v28, 0.0 }
 0x277   :  { %704 = vst [vmem:[#allocation7 + $0x48] sm:$0xff] %v688_v63  ;;  %v612_v31 = vpop.f32.mrf.mxu2 }
 0x278   :  { %v637_v23 = vmul.f32 %v612_v31, %v1229_v41 }
 0x27a   :  { %v657_v37 = vadd.f32 %v1261_v19, %v637_v23 }
 0x27c   :  { %v673_v38 = vmax.f32 %v657_v37, 0.0 }
 0x27e   :  { %v689_v32 = vsel %vm451_vm14, %v673_v38, 0.0 }
 0x27f   :  { %705 = vst [vmem:[#allocation7 + $0x50] sm:$0xff] %v689_v32  ;;  %v614_v36 = vpop.f32.mrf.mxu2 }
 0x280   :  { %v638_v44 = vmul.f32 %v614_v36, %v1239_v5 }
 0x282   :  { %v658_v55 = vadd.f32 %v1261_v19, %v638_v44 }
 0x284   :  { %v674_v29 = vmax.f32 %v658_v55, 0.0 }
 0x286   :  { %v690_v41 = vsel %vm452_vm15, %v674_v29, 0.0 }
 0x287   :  { %706 = vst [vmem:[#allocation7 + $0x58] sm:$0xff] %v690_v41 }
 0x288   :  { %723 = dma.vmem_to_hbm [thread:$0]  %s716_s25, 2048, %s718_s28, [#allocation4], %s895_s29, %s895_s29, %s896_s30  }
 0x289   :  { %892 = dma.done.wait [#allocation4], 2048  }
 0x28a   :  { %893 = vsyncadd [#allocation4], 4294965248 }
 0x28b   :  { %728 = vsyncpa [#allocation3], 1 }
 0x28c   :  { %729 = vsyncpa [#allocation6], 1 }
 0x28d   :  { %730 = vsyncpa [#allocation4], 1 }

</bundles_post_ra>
